<compile_context>
chip_gen: v7x
topology: tpu7x:2x2x1
jax: 0.10.0
libtpu: 0.0.40
codegen_flags: <defaults>
</compile_context>

<pallas_src>
import functools

import jax
import jax.numpy as jnp
from jax.experimental import pallas as pl
from jax.experimental.pallas import tpu as pltpu


def _chomp_dma_kernel(x_hbm, o_hbm, sem, *, row_bounds, col_bounds):
    """HBM->HBM copy of the kept (leading) columns of each row chunk.

    x_hbm: (G, T*F)     ref in HBM (memory_space=pl.ANY)
    o_hbm: (G, T_out*F) ref in HBM (memory_space=pl.ANY)
    sem:   (n_copies,)  DMA completion semaphores

    row_bounds / col_bounds are static Python (start, end) tuples, so every
    descriptor has static bounds (zero runtime index math).  All DMAs are
    started up-front for DMA-engine parallelism, then waited on.
    """
    copies = []
    idx = 0
    for r0, r1 in row_bounds:
        for c0, c1 in col_bounds:
            cp = pltpu.make_async_copy(
                x_hbm.at[r0:r1, c0:c1],
                o_hbm.at[r0:r1, c0:c1],
                sem.at[idx],
            )
            cp.start()
            copies.append(cp)
            idx += 1
    for cp in copies:
        cp.wait()


def _split_bounds(total, parts):
    """Split range [0, total) into <=parts contiguous (start, end) chunks."""
    parts = max(1, min(parts, total))
    chunk = -(-total // parts)  # ceil-div, static
    bounds = []
    start = 0
    while start < total:
        end = min(start + chunk, total)
        bounds.append((start, end))
        start = end
    return bounds


def _default_max_dma():
    """Generation-dependent cap on outstanding DMA descriptors."""
    try:
        kind = jax.devices()[0].device_kind.lower()
    except Exception:
        return 8
    if "v5 lite" in kind or "v5e" in kind or "v5lite" in kind:
        return 4   # ~0.82 TB/s HBM: a few large descriptors saturate it
    if "v7" in kind:
        return 16  # ~3.2 TB/s HBM: keep more transfers outstanding
    return 8       # v6e and default


def chomp_t_fused(x, t):
    """Fusion-friendly path: plain slice that fuses into a JAX/XLA consumer."""
    return x[:, :, : x.shape[2] - t, :]


def chomp_t(x, t, *, max_dma=None, target_bytes_per_dma=512 << 10):
    """x: [B, C, T, F] -> [B, C, T - t, F], equivalent to x[:, :, 0:-t, :]."""
    B, C, T, F = x.shape
    assert 0 < t < T, "t must satisfy 0 < t < T"
    T_out = T - t
    G = B * C
    itemsize = jnp.dtype(x.dtype).itemsize
    out_bytes = G * T_out * F * itemsize

    # Free, layout-preserving collapse: rows = (B, C), cols = (T, F).  The kept
    # region (leading T_out time steps) of each row is a single contiguous run
    # of T_out*F elements -> each DMA descriptor is a large contiguous burst.
    x2 = x.reshape(G, T * F)

    # Size descriptor count by bytes moved, capped per chip generation.
    if max_dma is None:
        max_dma = _default_max_dma()
    desired = max(1, out_bytes // max(1, target_bytes_per_dma))
    n_dma = int(max(1, min(max_dma, desired)))

    # Split rows first; if there are not enough rows, also split the kept
    # column range (at time-step boundaries) to keep several DMAs in flight.
    row_splits = min(n_dma, G)
    col_splits = min(-(-n_dma // row_splits), T_out)
    row_bounds = _split_bounds(G, row_splits)
    col_time_bounds = _split_bounds(T_out, col_splits)
    col_bounds = [(a * F, b * F) for a, b in col_time_bounds]
    n_copies = len(row_bounds) * len(col_bounds)

    kernel = functools.partial(
        _chomp_dma_kernel, row_bounds=row_bounds, col_bounds=col_bounds)

    out2 = pl.pallas_call(
        kernel,
        out_shape=jax.ShapeDtypeStruct((G, T_out * F), x.dtype),
        in_specs=[pl.BlockSpec(memory_space=pl.ANY)],
        out_specs=pl.BlockSpec(memory_space=pl.ANY),
        scratch_shapes=[pltpu.SemaphoreType.DMA((n_copies,))],
        cost_estimate=pl.CostEstimate(
            flops=0, transcendentals=0, bytes_accessed=2 * out_bytes),
    )(x2)

    return out2.reshape(B, C, T_out, F)


if __name__ == "__main__":
    key = jax.random.PRNGKey(0)

    # Case 1: lane-unaligned feature dim (F=16) — now a single contiguous
    # T_out*F-byte burst per row thanks to the (T, F) collapse.
    t1 = 8
    x1 = jax.random.normal(key, (2, 4, 16, 16), dtype=jnp.float32)
    out1 = jax.block_until_ready(chomp_t(x1, t1))
    ref1 = x1[:, :, 0:-t1, :]
    assert out1.shape == ref1.shape and out1.dtype == ref1.dtype
    assert jnp.array_equal(out1, ref1), "mismatch vs reference slice (case 1)"

    # Case 2: arbitrary chomp amount (T_out = 11, NOT 8-aligned), lane-dense F.
    t2 = 5
    x2 = jax.random.normal(jax.random.PRNGKey(0), (2, 4, 16, 128), jnp.float32)
    out2 = jax.block_until_ready(chomp_t(x2, t2))
    ref2 = x2[:, :, 0:-t2, :]
    assert out2.shape == ref2.shape
    assert jnp.array_equal(out2, ref2), "mismatch vs reference slice (case 2)"

    # Case 3: B=C=1 (G=1) with a tiny per-descriptor byte target so the
    # column (time-step) splitting path is exercised: multiple concurrent
    # DMAs even when there is only one row.
    t3 = 16
    x3 = jax.random.normal(jax.random.PRNGKey(0), (1, 1, 64, 128), jnp.float32)
    out3 = jax.block_until_ready(
        chomp_t(x3, t3, target_bytes_per_dma=4 << 10))
    ref3 = x3[:, :, 0:-t3, :]
    assert out3.shape == ref3.shape
    assert jnp.array_equal(out3, ref3), "mismatch vs reference slice (case 3)"

    # Fusion-preferred path sanity check.
    assert jnp.array_equal(chomp_t_fused(x1, t1), ref1)

    print("KERNEL_OK")
</pallas_src>

<mosaic_0001>
module attributes {stable_mosaic.version = 11 : i64} {
  func.func @_chomp_dma_kernel(%arg0: memref<8x256xf32, #tpu.memory_space<any>>, %arg1: memref<8x128xf32, #tpu.memory_space<any>>, %arg2: memref<1x!tpu.dma_semaphore, #tpu.memory_space<semaphore_mem>>) attributes {dimension_semantics = [], scalar_prefetch = 0 : i64, scratch_operands = 1 : i64, tpu.core_type = #tpu.core_type<tc>} {
    %c0_i32 = arith.constant 0 : i32
    %c0_i32_0 = arith.constant 0 : i32
    %c0_i32_1 = arith.constant 0 : i32
    %0 = tpu.memref_slice %arg0[%c0_i32_0, %c0_i32_1] : memref<8x256xf32, #tpu.memory_space<any>> -> memref<8x128xf32, #tpu.memory_space<any>>
    %c0_i32_2 = arith.constant 0 : i32
    %c0_i32_3 = arith.constant 0 : i32
    %1 = tpu.memref_slice %arg1[%c0_i32_2, %c0_i32_3] : memref<8x128xf32, #tpu.memory_space<any>> -> memref<8x128xf32, #tpu.memory_space<any>>
    %2 = tpu.memref_slice %arg2[%c0_i32] : memref<1x!tpu.dma_semaphore, #tpu.memory_space<semaphore_mem>> -> memref<1x!tpu.dma_semaphore, #tpu.memory_space<semaphore_mem>>
    %3 = tpu.memref_squeeze %2 : memref<1x!tpu.dma_semaphore, #tpu.memory_space<semaphore_mem>> -> memref<!tpu.dma_semaphore, #tpu.memory_space<semaphore_mem>>
    tpu.enqueue_dma source(%0 : memref<8x128xf32, #tpu.memory_space<any>>) target(%1 : memref<8x128xf32, #tpu.memory_space<any>>) target_semaphore(%3 : memref<!tpu.dma_semaphore, #tpu.memory_space<semaphore_mem>>)
    %c0_i32_4 = arith.constant 0 : i32
    %c0_i32_5 = arith.constant 0 : i32
    %c0_i32_6 = arith.constant 0 : i32
    %4 = tpu.memref_slice %arg0[%c0_i32_5, %c0_i32_6] : memref<8x256xf32, #tpu.memory_space<any>> -> memref<8x128xf32, #tpu.memory_space<any>>
    %c0_i32_7 = arith.constant 0 : i32
    %c0_i32_8 = arith.constant 0 : i32
    %5 = tpu.memref_slice %arg1[%c0_i32_7, %c0_i32_8] : memref<8x128xf32, #tpu.memory_space<any>> -> memref<8x128xf32, #tpu.memory_space<any>>
    %6 = tpu.memref_slice %arg2[%c0_i32_4] : memref<1x!tpu.dma_semaphore, #tpu.memory_space<semaphore_mem>> -> memref<1x!tpu.dma_semaphore, #tpu.memory_space<semaphore_mem>>
    %7 = tpu.memref_squeeze %6 : memref<1x!tpu.dma_semaphore, #tpu.memory_space<semaphore_mem>> -> memref<!tpu.dma_semaphore, #tpu.memory_space<semaphore_mem>>
    tpu.wait_dma2 semaphore(%7 : memref<!tpu.dma_semaphore, #tpu.memory_space<semaphore_mem>>) src(%4 : memref<8x128xf32, #tpu.memory_space<any>>) dst(%5 : memref<8x128xf32, #tpu.memory_space<any>>)
    return
  }
}

</mosaic_0001>

<bundles_post_ra>
// kernel: tpu_custom_call.1
= control target key start
LH: loop header
LB: loop body
LE: loop exit
PB: predicated region body
PF: predicated region fallthrough
CT: control target
= control target key end

     0   :  { %s35_s6 = smov [#allocation2]   ;;  %s36_s7 = smov [#allocation3]   ;;  %s54_s0 = inlined_call_operand.hbm [shape: f32[8,256], index: 0, kind: input, shape index: {}]   ;;  %s55_s1 = inlined_call_operand.hbm [shape: f32[8,128], index: 1, kind: output, shape index: {}]  }
   0x1   :  { %s37_s8 = smov 0  }
   0x2   :  { %18 = dma.general %s54_s0, 128, %s55_s1, %s35_s6, %s36_s7, [#allocation4], %s37_s8, 0  }
   0x3   :  { %33 = dma.done.wait [#allocation2], 128 }
   0x4   :  { %34 = vsyncadd [#allocation2], 4294967168 }
   0x5   :  { %23 = vsyncmov [#allocation2] }
   0x8   :  { %s24_s13 = vpop.sfrf %23 }
   0x9   :  { %p29_p0 = scmp.ne.s32.totalorder %s24_s13, 0 }
   0xb   :  { %28 = shalt.err (%p29_p0)  }

</bundles_post_ra>
